<compile_context>
chip_gen: v7x
topology: tpu7x:2x2x1
jax: 0.10.0
libtpu: 0.0.40
codegen_flags: <defaults>
</compile_context>

<pallas_src>
import jax
import jax.numpy as jnp
from jax.experimental import pallas as pl
from jax.experimental.pallas import tpu as pltpu


def _round_up(x, m):
    return ((x + m - 1) // m) * m


def _vmem_capacity_bytes():
    """Per-TensorCore VMEM capacity; conservative fallback if unavailable."""
    try:
        info = pltpu.get_tpu_info()
        cap = getattr(info, "vmem_capacity_bytes", None)
        if cap:
            return int(cap)
    except Exception:
        pass
    return 64 * 1024 * 1024  # v7x per-TC size (smallest supported generation)


def _choose_tiles(B, L, H, itemsize, vmem_cap):
    """Pick (tb, tl): layout-legal, VMEM-budgeted, megacore-friendly tiles."""
    sublane = 32 // itemsize            # 8 (f32) / 16 (bf16) / 32 (int8)

    # Batch tile: full B when tiny (full-extent blocks are always legal).
    # When B is large enough, split into >= 2 tiles so the "parallel" grid
    # axis feeds both v7x TensorCores; keep tb sublane-aligned for layout.
    if B <= sublane:
        tb = B
    else:
        tb = min(128, _round_up(pl.cdiv(B, 2), sublane))

    # Encoder tile: ~4-8 MiB of *effective* (layout-padded) bytes, derived
    # from device VMEM (64 MiB on v7x, 128 MiB on v5e/v6e), leaving room for
    # double buffering, the resident (tb, L) output block and the scratch.
    row_bytes = _round_up(tb, sublane) * _round_up(H, 128) * itemsize
    enc_budget = max(4 * 1024 * 1024, min(8 * 1024 * 1024, vmem_cap // 12))
    max_tl = max(1, enc_budget // row_bytes)
    if L <= max_tl:
        tl = L
    elif max_tl >= 8:
        tl = (max_tl // 8) * 8
    else:
        tl = max_tl
    return tb, tl


def _vmem_limit_bytes(vmem_cap, B, L, H, tb, tl, nl, itemsize):
    """Scoped-VMEM request: padded tile sizes x double-buffering + headroom."""
    sublane = 32 // itemsize
    tb_pad = _round_up(tb, sublane)
    enc = tl * tb_pad * _round_up(H, 128) * itemsize
    hid = tb_pad * _round_up(H, 128) * itemsize
    out = tb_pad * _round_up(L, 128) * itemsize
    scr = _round_up(nl * tl, 8) * _round_up(tb, 128) * 4
    total = 2 * (enc + hid + out) + scr + (4 << 20)          # + headroom
    return int(min((vmem_cap * 3) // 4, max(32 << 20, total)))


def _attn_kernel_single(h_ref, e_ref, o_ref):
    """L fits in one tile: fused scores + softmax, no staging scratch.

    h_ref: (tb, H)      decoder hidden rows for this batch tile
    e_ref: (L, tb, H)   full encoder sequence, native (L, B, H) layout
    o_ref: (tb, L)      lane-dense attention weights
    """
    # VPU dot over H: scores[l, b] = sum_h e[l, b, h] * h[b, h]
    # (multiply in input dtype, accumulate in f32 — no widened (L,tb,H) temp).
    scores = jnp.sum(e_ref[...] * h_ref[...][None, :, :], axis=-1,
                     dtype=jnp.float32)                       # (L, tb)
    s = scores.T                                              # (tb, L) lane-dense
    m = jnp.max(s, axis=-1, keepdims=True)
    p = jnp.exp(s - m)
    denom = jnp.sum(p, axis=-1, keepdims=True)
    o_ref[...] = (p * pl.reciprocal(denom)).astype(o_ref.dtype)


def _attn_kernel_multi(h_ref, e_ref, o_ref, s_ref):
    """L is tiled: stage raw scores across L tiles, finalize on the last one.

    h_ref: (tb, H); e_ref: (tl, tb, H); o_ref: (tb, L) resident across L axis
    s_ref: (nl*tl, tb) f32 staging scratch (persists across the L grid axis)
    """
    l = pl.program_id(1)
    nl = pl.num_programs(1)
    tl = e_ref.shape[0]

    scores = jnp.sum(e_ref[...] * h_ref[...][None, :, :], axis=-1,
                     dtype=jnp.float32)                       # (tl, tb)
    start = pl.multiple_of(l * tl, tl)
    s_ref[pl.ds(start, tl), :] = scores

    # Finalize: masked, numerically-stable softmax over the full L axis.
    @pl.when(l == nl - 1)
    def _finalize():
        L = o_ref.shape[1]
        s_lb = s_ref[...]                                     # (nl*tl, tb)
        # Neutralize padded tail rows of the last L block (keyed to nl*tl > L).
        if s_lb.shape[0] != L:
            row = jax.lax.broadcasted_iota(jnp.int32, s_lb.shape, 0)
            s_lb = jnp.where(row < L, s_lb, -jnp.inf)
        s = s_lb.T                                            # (tb, nl*tl) lane-dense
        m = jnp.max(s, axis=-1, keepdims=True)
        p = jnp.exp(s - m)
        denom = jnp.sum(p, axis=-1, keepdims=True)
        probs = p * pl.reciprocal(denom)                      # exact reciprocal
        o_ref[...] = probs[:, :L].astype(o_ref.dtype)


def attn_forward(hidden, encoder_outputs):
    """hidden: (1, B, H), encoder_outputs: (L, B, H) -> weights (B, 1, L)."""
    L, B, H = encoder_outputs.shape
    assert hidden.shape == (1, B, H)

    h_bm = hidden[0]                                          # (B, H) — free squeeze
    itemsize = jnp.dtype(encoder_outputs.dtype).itemsize
    vmem_cap = _vmem_capacity_bytes()
    tb, tl = _choose_tiles(B, L, H, itemsize, vmem_cap)
    nb = pl.cdiv(B, tb)
    nl = pl.cdiv(L, tl)
    vmem_limit = _vmem_limit_bytes(vmem_cap, B, L, H, tb, tl, nl, itemsize)

    if nl == 1:
        out_bl = pl.pallas_call(
            _attn_kernel_single,
            out_shape=jax.ShapeDtypeStruct((B, L), hidden.dtype),
            grid_spec=pltpu.PrefetchScalarGridSpec(
                num_scalar_prefetch=0,
                grid=(nb,),
                in_specs=[
                    pl.BlockSpec((tb, H), lambda i: (i, 0)),         # hidden (B, H)
                    pl.BlockSpec((L, tb, H), lambda i: (0, i, 0)),   # encoder (L, B, H)
                ],
                out_specs=pl.BlockSpec((tb, L), lambda i: (i, 0)),   # lane-dense (B, L)
            ),
            compiler_params=pltpu.CompilerParams(
                dimension_semantics=("parallel",),
                vmem_limit_bytes=vmem_limit,
            ),
        )(h_bm, encoder_outputs)
    else:
        out_bl = pl.pallas_call(
            _attn_kernel_multi,
            out_shape=jax.ShapeDtypeStruct((B, L), hidden.dtype),
            grid_spec=pltpu.PrefetchScalarGridSpec(
                num_scalar_prefetch=0,
                grid=(nb, nl),                                       # B parallel, L last
                in_specs=[
                    pl.BlockSpec((tb, H), lambda i, l: (i, 0)),
                    pl.BlockSpec((tl, tb, H), lambda i, l: (l, i, 0)),
                ],
                out_specs=pl.BlockSpec((tb, L), lambda i, l: (i, 0)),  # resident across L
                scratch_shapes=[pltpu.VMEM((nl * tl, tb), jnp.float32)],
            ),
            compiler_params=pltpu.CompilerParams(
                dimension_semantics=("parallel", "arbitrary"),
                vmem_limit_bytes=vmem_limit,
            ),
        )(h_bm, encoder_outputs)

    # (B, L) -> (B, 1, L): pure expand_dims, no data movement, no extra kernel.
    return out_bl[:, None, :]


def _reference(hidden, encoder_outputs):
    h = jnp.transpose(hidden, (1, 0, 2))                      # (B, 1, H)
    e = jnp.transpose(encoder_outputs, (1, 2, 0))             # (B, H, L)
    energies = jnp.matmul(h, e)[:, 0, :]                      # (B, L)
    return jax.nn.softmax(energies, axis=1)[:, None, :]


if __name__ == "__main__":
    B, L, H = 2, 8, 32
    key = jax.random.PRNGKey(0)
    k1, k2 = jax.random.split(key)
    hidden = jax.random.normal(k1, (1, B, H), dtype=jnp.float32)
    encoder_outputs = jax.random.normal(k2, (L, B, H), dtype=jnp.float32)

    out = attn_forward(hidden, encoder_outputs)
    jax.block_until_ready(out)

    ref = _reference(hidden, encoder_outputs)
    assert out.shape == (B, 1, L)
    assert jnp.allclose(out, ref, atol=1e-5, rtol=1e-5), "mismatch vs reference"
    assert jnp.allclose(jnp.sum(out, axis=-1), 1.0, atol=1e-5), "rows not normalized"

    print("KERNEL_OK")
</pallas_src>

<mosaic_0001>
module attributes {stable_mosaic.version = 11 : i64} {
  func.func @_attn_kernel_single(%arg0: i32, %arg1: memref<2x32xf32, #tpu.memory_space<vmem>>, %arg2: memref<8x2x32xf32, #tpu.memory_space<vmem>>, %arg3: memref<2x8xf32, #tpu.memory_space<vmem>>) attributes {dimension_semantics = [#tpu.dimension_semantics<parallel>], iteration_bounds = array<i64: 1>, scalar_prefetch = 0 : i64, scratch_operands = 0 : i64, tpu.core_type = #tpu.core_type<tc>, window_params = [{transform_indices = @transform_0, window_bounds = array<i64: 2, 32>}, {transform_indices = @transform_1, window_bounds = array<i64: 8, 2, 32>}, {transform_indices = @transform_2, window_bounds = array<i64: 2, 8>}]} {
    %c0 = arith.constant 0 : index
    %c0_0 = arith.constant 0 : index
    %c0_1 = arith.constant 0 : index
    %0 = vector.load %arg2[%c0, %c0_0, %c0_1] : memref<8x2x32xf32, #tpu.memory_space<vmem>>, vector<8x2x32xf32>
    %c0_2 = arith.constant 0 : index
    %c0_3 = arith.constant 0 : index
    %1 = vector.load %arg1[%c0_2, %c0_3] : memref<2x32xf32, #tpu.memory_space<vmem>>, vector<2x32xf32>
    %2 = vector.shape_cast %1 : vector<2x32xf32> to vector<1x2x32xf32>
    %3 = vector.broadcast %2 : vector<1x2x32xf32> to vector<8x2x32xf32>
    %4 = arith.mulf %0, %3 : vector<8x2x32xf32>
    %cst = arith.constant dense<0.000000e+00> : vector<8x2xf32>
    %5 = vector.multi_reduction <add>, %4, %cst [2] : vector<8x2x32xf32> to vector<8x2xf32>
    %6 = tpu.transpose %5, [1, 0] : vector<8x2xf32> -> vector<2x8xf32>
    %cst_4 = arith.constant dense<0xFF800000> : vector<2xf32>
    %7 = vector.multi_reduction <maximumf>, %6, %cst_4 [1] : vector<2x8xf32> to vector<2xf32>
    %8 = vector.shape_cast %7 : vector<2xf32> to vector<2x1xf32>
    %9 = vector.broadcast %8 : vector<2x1xf32> to vector<2x8xf32>
    %10 = arith.subf %6, %9 : vector<2x8xf32>
    %11 = math.exp %10 : vector<2x8xf32>
    %cst_5 = arith.constant dense<0.000000e+00> : vector<2xf32>
    %12 = vector.multi_reduction <add>, %11, %cst_5 [1] : vector<2x8xf32> to vector<2xf32>
    %13 = vector.shape_cast %12 : vector<2xf32> to vector<2x1xf32>
    %14 = tpu.reciprocal %13 : vector<2x1xf32> -> vector<2x1xf32>
    %15 = vector.broadcast %14 : vector<2x1xf32> to vector<2x8xf32>
    %16 = arith.mulf %11, %15 : vector<2x8xf32>
    %c0_6 = arith.constant 0 : index
    %c0_7 = arith.constant 0 : index
    %17 = vector.load %arg3[%c0_6, %c0_7] : memref<2x8xf32, #tpu.memory_space<vmem>>, vector<2x8xf32>
    tpu.vector_store %arg3[%c0_6, %c0_7], %16 {strides = array<i32>} : memref<2x8xf32, #tpu.memory_space<vmem>>, vector<2x8xf32>,
    return
  }
  func.func @transform_0(%arg0: i32) -> (i32, i32) {
    %c0_i32 = arith.constant 0 : i32
    %c0_i32_0 = arith.constant 0 : i32
    return %arg0, %c0_i32 : i32, i32
  }
  func.func @transform_1(%arg0: i32) -> (i32, i32, i32) {
    %c0_i32 = arith.constant 0 : i32
    %c0_i32_0 = arith.constant 0 : i32
    %c0_i32_1 = arith.constant 0 : i32
    return %c0_i32, %arg0, %c0_i32_0 : i32, i32, i32
  }
  func.func @transform_2(%arg0: i32) -> (i32, i32) {
    %c0_i32 = arith.constant 0 : i32
    %c0_i32_0 = arith.constant 0 : i32
    return %arg0, %c0_i32 : i32, i32
  }
}

</mosaic_0001>

<bundles_post_ra>
// kernel: tpu_custom_call.1
= control target key start
LH: loop header
LB: loop body
LE: loop exit
PB: predicated region body
PF: predicated region fallthrough
CT: control target
= control target key end

     0   :  { %7 = vsyncpa [#allocation3], 0  ;;  %s354_s0 = inlined_call_operand.hbm [shape: f32[2,32], index: 0, kind: input, shape index: {}]   ;;  %s355_s1 = inlined_call_operand.hbm [shape: f32[8,2,32], index: 1, kind: input, shape index: {}]   ;;  %s356_s2 = inlined_call_operand.hbm [shape: f32[2,8], index: 2, kind: output, shape index: {}]  }
   0x1   :  { %8 = vsyncpa [#allocation6], 0 }
   0x2   :  { %9 = vsyncpa [#allocation4], 0  ;;  %s280_s9 = smov [#allocation2]   ;;  %s281_s11 = smov [#allocation5]  }
   0x3   :  { %s16_s10 = sshll.u32 %s280_s9, 4  ;;  %s25_s12 = sshll.u32 %s281_s11, 4  ;;  %s17_s10 = int_to_ptr.vmem [resolvable:$true] %s16_s10  ;;  %s300_s12 = int_to_ptr.vmem [resolvable:$true] %s25_s12 }
   0x4   :  { %s208_s15 = scalar_lea.hbm %s354_s0, 32 }
   0x5   :  { %p209_p0 = scmp.ne.s32.totalorder %s354_s0, %s208_s15  ;;  %p212_p1 = scmp.lt.u32.totalorder %s208_s15, %s354_s0 }
   0x7   :  { %p214_p2 = pnand %p212_p1, %p209_p0 }
   0x9   :  { %217 = shalt.err (!%p214_p2)
}
   0xa   :  { %s218_s20 = scalar_lea.vmem %s17_s10, 32  ;;  %p223_p4 = scmp.lt.s32.totalorder %s17_s10, %s17_s10 }
   0xb   :  { %p219_p3 = scmp.ne.s32.totalorder %s17_s10, %s218_s20  ;;  %p224_p5 = scmp.lt.s32.totalorder %s218_s20, %s218_s20 }
   0xd   :  { %p225_p6 = por %p224_p5, %p223_p4 }
   0xf   :  { %p226_p7 = pnand %p225_p6, %p219_p3 }
  0x11   :  { %229 = shalt.err (!%p226_p7)
}
  0x12   :  { %19 = dma.hbm_to_vmem [thread:$0]  %s354_s0, 32, %s17_s10, [#allocation3]  }
  0x13   :  { %s230_s25 = scalar_lea.hbm %s355_s1, 256 }
  0x14   :  { %p231_p8 = scmp.ne.s32.totalorder %s355_s1, %s230_s25  ;;  %p234_p9 = scmp.lt.u32.totalorder %s230_s25, %s355_s1 }
  0x16   :  { %p236_p10 = pnand %p234_p9, %p231_p8 }
  0x18   :  { %239 = shalt.err (!%p236_p10)
}
  0x19   :  { %s240_s30 = scalar_lea.vmem %s300_s12, 256  ;;  %p245_p12 = scmp.lt.s32.totalorder %s300_s12, %s300_s12 }
  0x1a   :  { %p241_p11 = scmp.ne.s32.totalorder %s300_s12, %s240_s30  ;;  %p246_p13 = scmp.lt.s32.totalorder %s240_s30, %s240_s30 }
  0x1c   :  { %p247_p0 = por %p246_p13, %p245_p12 }
  0x1e   :  { %p248_p1 = pnand %p247_p0, %p241_p11 }
  0x20   :  { %251 = shalt.err (!%p248_p1)
}
  0x21   :  { %s282_s0 = smov 32   ;;  %s283_s3 = smov 2  }
  0x22   :  { %31 = dma.hbm_to_vmem [thread:$0]  %s355_s1, 256, %s300_s12, [#allocation6], %s282_s0, %s282_s0, %s283_s3  }
  0x23   :  { %274 = dma.done.wait [#allocation3], 32  }
  0x24   :  { %275 = vsyncadd [#allocation3], 4294967264 }
  0x25   :  { %276 = dma.done.wait [#allocation6], 256  }
  0x26   :  { %277 = vsyncadd [#allocation6], 4294967040  ;;  %vm55_vm0 = vcmask 254976   ;;  %v38_v0 = vld [vmem:[#allocation5] sm:$0x3]  ;;  %v88_v25 = vlaneseq  ;;  %vm122_vm1 = vcmask 1041409  }
  0x27   :  { %v46_v1 = vld [vmem:[#allocation2] sm:$0x3]  ;;  %v40_v2 = vld [vmem:[#allocation5 + $0x4] sm:$0x3]  ;;  %v39_v5 = vld [vmem:[#allocation5 + $0x2] sm:$0x3] }
  0x28   :  { %v47_v3 = vmul.f32 %v46_v1, %v38_v0  ;;  %v49_v4 = vmul.f32 %v46_v1, %v40_v2  ;;  %v41_v6 = vld [vmem:[#allocation5 + $0x6] sm:$0x3]  ;;  %v48_v7 = vmul.f32 %v46_v1, %v39_v5  ;;  %v42_v9 = vld [vmem:[#allocation5 + $0x8] sm:$0x3]  ;;  %v43_v10 = vld [vmem:[#allocation5 + $0xa] sm:$0x3] }
  0x29   :  { %v50_v8 = vmul.f32 %v46_v1, %v41_v6  ;;  %v51_v15 = vmul.f32 %v46_v1, %v42_v9  ;;  %v52_v16 = vmul.f32 %v46_v1, %v43_v10  ;;  %v44_v17 = vld [vmem:[#allocation5 + $0xc] sm:$0x3]  ;;  %v45_v18 = vld [vmem:[#allocation5 + $0xe] sm:$0x3]  ;;  %v89_v26 = vand.u32 127, %v88_v25  ;;  %s284_s1 = smov [#allocation7]  }
  0x2a   :  { %v56_v11 = vsel %vm55_vm0, %v47_v3, 0.0  ;;  %v62_v12 = vsel %vm55_vm0, %v49_v4, 0.0  ;;  %v59_v13 = vsel %vm55_vm0, %v48_v7, 0.0  ;;  %v53_v21 = vmul.f32 %v46_v1, %v44_v17  ;;  %s188_s6 = sshll.u32 %s284_s1, 4  ;;  %s189_s6 = int_to_ptr.vmem [resolvable:$true] %s188_s6 }
  0x2b   :  { %57 = vadd.xlane.f32.xlu0 %v56_v11  ;;  %63 = vadd.xlane.f32.xlu1 %v62_v12  ;;  %v65_v14 = vsel %vm55_vm0, %v50_v8, 0.0  ;;  %v68_v19 = vsel %vm55_vm0, %v51_v15, 0.0  ;;  %v71_v20 = vsel %vm55_vm0, %v52_v16, 0.0  ;;  %v54_v22 = vmul.f32 %v46_v1, %v45_v18  ;;  %s252_s7 = scalar_lea.vmem %s189_s6, 32  ;;  %p257_p3 = scmp.lt.s32.totalorder %s189_s6, %s189_s6 }
  0x2c   :  { %v74_v23 = vsel %vm55_vm0, %v53_v21, 0.0  ;;  %v91_v27 = vshrl.u32 %v88_v25, 7  ;;  %vm124_vm2 = vcmask 1042434   ;;  %vm126_vm3 = vcmask 1043459   ;;  %p253_p2 = scmp.ne.s32.totalorder %s189_s6, %s252_s7  ;;  %p258_p4 = scmp.lt.s32.totalorder %s252_s7, %s252_s7 }
  0x2d   :  { %v77_v24 = vsel %vm55_vm0, %v54_v22, 0.0  ;;  %vm128_vm4 = vcmask 1044484   ;;  %vm130_vm5 = vcmask 1045509   ;;  %vm132_vm6 = vcmask 1046534  }
  0x2e   :  { %v92_v30 = vsub.s32 %v89_v26, %v91_v27  ;;  %vm134_vm7 = vcmask 1047559   ;;  %vm169_vm8 = vcmask 58368   ;;  %p259_p5 = por %p258_p4, %p257_p3 }
  0x2f   :  { %60 = vadd.xlane.f32.xlu0 %v59_v13  ;;  %66 = vadd.xlane.f32.xlu1 %v65_v14 }
  0x30   :  { %p260_p6 = pnand %p259_p5, %p253_p2 }
  0x33   :  { %69 = vadd.xlane.f32.xlu0 %v68_v19  ;;  %72 = vadd.xlane.f32.xlu1 %v71_v20 }
  0x37   :  { %75 = vadd.xlane.f32.xlu0 %v74_v23  ;;  %78 = vadd.xlane.f32.xlu1 %v77_v24 }
  0xb8   :  { %v58_v28 = vpop.xlane.xlu0 %57  ;;  %v64_v29 = vpop.xlane.xlu1 %63 }
  0xb9   :  { %v93_v33 = vrot.slane %v58_v28, %v92_v30  ;;  %v101_v36 = vrot.slane %v64_v29, %v92_v30 }
  0xbc   :  { %v61_v31 = vpop.xlane.xlu0 %60  ;;  %v67_v32 = vpop.xlane.xlu1 %66 }
  0xbd   :  { %v97_v34 = vrot.slane %v61_v31, %v92_v30  ;;  %v105_v35 = vrot.slane %v67_v32, %v92_v30 }
  0xbf   :  { %v123_v37 = vsel %vm122_vm1, %v97_v34, %v93_v33 }
  0xc0   :  { %v125_v38 = vsel %vm124_vm2, %v101_v36, %v123_v37  ;;  %v70_v39 = vpop.xlane.xlu0 %69  ;;  %v73_v40 = vpop.xlane.xlu1 %72 }
  0xc1   :  { %v127_v41 = vsel %vm126_vm3, %v105_v35, %v125_v38  ;;  %v109_v42 = vrot.slane %v70_v39, %v92_v30  ;;  %v113_v43 = vrot.slane %v73_v40, %v92_v30 }
  0xc3   :  { %v129_v44 = vsel %vm128_vm4, %v109_v42, %v127_v41 }
  0xc4   :  { %v76_v45 = vpop.xlane.xlu0 %75  ;;  %v79_v46 = vpop.xlane.xlu1 %78  ;;  %v131_v49 = vsel %vm130_vm5, %v113_v43, %v129_v44 }
  0xc5   :  { %v117_v47 = vrot.slane %v76_v45, %v92_v30  ;;  %v121_v48 = vrot.slane %v79_v46, %v92_v30 }
  0xc7   :  { %v133_v50 = vsel %vm132_vm6, %v117_v47, %v131_v49 }
  0xc8   :  { %v135_v51 = vsel %vm134_vm7, %v121_v48, %v133_v50 }
  0xc9   :  { %137 = vxpose.xlu0.b32.start.end [1/1] (short) (narrow) %v135_v51, 8 }
 0x149   :  { %v153_v52 = vpop.trf.xlu0 }
 0x14a   :  { %v170_v53 = vsel %vm169_vm8, %v153_v52, -inf }
 0x14b   :  { %171 = vmax.xlane.f32.xlu1 %v170_v53 }
 0x1d8   :  { %v172_v54 = vpop.xlane.xlu1 %171 }
 0x1d9   :  { %v173_v55 = vsub.f32 %v153_v52, %v172_v54 }
 0x1db   :  { %v174_v56 = vmul.f32 1.442695, %v173_v55 }
 0x1dd   :  { %204 = vpow2.f32 %v174_v56 }
 0x1e7   :  { %v205_v57 = vpop.eup %204 }
 0x1e8   :  { %v176_v58 = vsel %vm169_vm8, %v205_v57, 0.0 }
 0x1e9   :  { %177 = vadd.xlane.f32.xlu1 %v176_v58 }
 0x276   :  { %v178_v59 = vpop.xlane.xlu1 %177 }
 0x277   :  { %206 = vrcp.f32 %v178_v59 }
 0x281   :  { %v207_v60 = vpop.eup %206 }
 0x282   :  { %v180_v61 = vmul.f32 %v207_v60, %v205_v57 }
 0x284   :  { %181 = vst.msk [vmem:[#allocation7] sm:$0x3] %vm169_vm8, %v180_v61 }
 0x285   :  { %263 = shalt.err (!%p260_p6)
}
 0x286   :  { %s264_s10 = scalar_lea.hbm %s356_s2, 32 }
 0x287   :  { %p265_p7 = scmp.ne.s32.totalorder %s356_s2, %s264_s10  ;;  %p268_p8 = scmp.lt.u32.totalorder %s264_s10, %s356_s2 }
 0x289   :  { %p270_p9 = pnand %p268_p8, %p265_p7 }
 0x28b   :  { %273 = shalt.err (!%p270_p9)
}
 0x28c   :  { %191 = dma.vmem_to_hbm [thread:$0]  %s189_s6, 32, %s356_s2, [#allocation4]  }
 0x28d   :  { %278 = dma.done.wait [#allocation4], 32  }
 0x28e   :  { %279 = vsyncadd [#allocation4], 4294967264 }
 0x28f   :  { %195 = vsyncpa [#allocation3], 1 }
 0x290   :  { %196 = vsyncpa [#allocation6], 1 }
 0x291   :  { %197 = vsyncpa [#allocation4], 1 }

</bundles_post_ra>
